<compile_context>
chip_gen: v7x
topology: tpu7x:2x2x1
jax: 0.10.0
libtpu: 0.0.40
codegen_flags: <defaults>
</compile_context>

<pallas_src>
import functools

import jax
import jax.numpy as jnp
from jax.experimental import pallas as pl
from jax.experimental.pallas import tpu as pltpu

LANE = 128      # vreg lane width
SUBLANE = 8     # vreg sublane count (f32)

# bf16 operands = full-rate MXU path on every generation; accumulation is f32.
MATMUL_DTYPE = jnp.bfloat16


def _round_up(n, m):
    return ((n + m - 1) // m) * m


# ----------------------------------------------------------------------------
# Single fused kernel: 6 x (matmul + bias + optional ReLU), all in VMEM
# ----------------------------------------------------------------------------
def _fused_mlp_kernel(x_ref, *refs, relu_flags):
    # refs = (w_0..w_{L-1}, b_0..b_{L-1}, o_ref)
    n_layers = len(relu_flags)
    w_refs = refs[:n_layers]
    b_refs = refs[n_layers:2 * n_layers]
    o_ref = refs[2 * n_layers]

    h = x_ref[...].astype(MATMUL_DTYPE)
    acc = None
    for idx, (w_ref, b_ref, relu) in enumerate(zip(w_refs, b_refs, relu_flags)):
        # Weights were pre-cast to MATMUL_DTYPE at prepare time; f32 accumulate.
        acc = jnp.dot(h, w_ref[...], preferred_element_type=jnp.float32)
        acc = acc + b_ref[...]
        if relu:
            acc = jnp.maximum(acc, 0.0)
        # layer3's Dropout(p=0.5) is identity in eval mode -> nothing to do.
        if idx != n_layers - 1:
            h = acc.astype(MATMUL_DTYPE)
    o_ref[...] = acc.astype(o_ref.dtype)


# ----------------------------------------------------------------------------
# Parameter construction (deterministic, synthetic) — unfolded form
# ----------------------------------------------------------------------------
def make_params(key, dims):
    """dims = [in_dim, h1, h2, h3, h4, h5, out_dim]."""
    params = []
    n_layers = len(dims) - 1
    keys = jax.random.split(key, n_layers * 4)
    eps = 1e-5
    for i in range(n_layers):
        fan_in, fan_out = dims[i], dims[i + 1]
        k_w, k_b, k_g, k_beta = keys[4 * i: 4 * i + 4]
        bound = 1.0 / jnp.sqrt(fan_in)
        w = jax.random.uniform(k_w, (fan_in, fan_out), jnp.float32, -bound, bound)
        b = jax.random.uniform(k_b, (fan_out,), jnp.float32, -bound, bound)
        is_out_layer = (i == n_layers - 1)
        if is_out_layer:
            scale = jnp.ones((fan_out,), jnp.float32)
            shift = jnp.zeros((fan_out,), jnp.float32)
        else:
            gamma = 1.0 + 0.1 * jax.random.normal(k_g, (fan_out,), jnp.float32)
            beta = 0.1 * jax.random.normal(k_beta, (fan_out,), jnp.float32)
            running_mean = 0.05 * jax.random.normal(
                jax.random.fold_in(k_g, 1), (fan_out,), jnp.float32)
            running_var = jnp.abs(
                1.0 + 0.1 * jax.random.normal(
                    jax.random.fold_in(k_b, 1), (fan_out,), jnp.float32))
            scale = gamma / jnp.sqrt(running_var + eps)
            shift = beta - running_mean * scale
        relu = (i in (0, 1, 3, 4))   # layer3 (Dropout/eval) and outlayer: no ReLU
        params.append((w, b, scale, shift, relu))
    return params


# ----------------------------------------------------------------------------
# One-time prepare: fold BN into (W', b'), pad, pre-cast weights to MATMUL_DTYPE
# ----------------------------------------------------------------------------
def prepare_padded_params(params):
    n_layers = len(params)
    padded = []
    relu_flags = []
    for i, (w, b, scale, shift, relu) in enumerate(params):
        K, N = w.shape
        w_folded = w * scale[None, :]
        b_folded = b * scale + shift
        # Contraction dim:
        #   layer 0 consumes the raw (unpadded) input -> keep true K (full-dim
        #   block is legal); later layers consume 128-lane activations -> pad.
        Kp = K if i == 0 else _round_up(K, LANE)
        # Output dim:
        #   intermediate layers padded to 128 lanes (lane-dense activations);
        #   final layer kept at true N so the kernel writes an unpadded output.
        Np = N if i == n_layers - 1 else _round_up(N, LANE)
        w_p = jnp.zeros((Kp, Np), jnp.float32).at[:K, :N].set(w_folded)
        b_p = jnp.zeros((1, Np), jnp.float32).at[:, :N].set(b_folded)
        # Padded columns stay exactly zero through every layer (zero weight
        # column + zero bias, ReLU(0)=0), so zeros propagate correctly.
        padded.append((w_p.astype(MATMUL_DTYPE), b_p))   # bias stays f32
        relu_flags.append(relu)
    return padded, tuple(relu_flags)


# ----------------------------------------------------------------------------
# Wrapper: (maybe) pad batch, launch the single fused kernel
# ----------------------------------------------------------------------------
def batch_net_forward(x, padded_params, relu_flags):
    B, K = x.shape
    assert K == padded_params[0][0].shape[0], "input feature dim mismatch"
    out_dim = padded_params[-1][0].shape[1]

    # Batch tile selection:
    #   * B <= 1024: one block (pad waste <= SUBLANE-1 rows, max amortization).
    #   * larger B: pick TB from {1024, 512, 256} minimizing pad waste (ties ->
    #     larger tile); keeps several grid steps so v7x's 2 TCs both get work.
    if B <= 1024:
        TB = _round_up(max(B, SUBLANE), SUBLANE)
    else:
        TB = -min((_round_up(B, t) - B, -t) for t in (1024, 512, 256))[1]
    Bp = _round_up(B, TB)

    x_p = x if Bp == B else jnp.zeros((Bp, K), x.dtype).at[:B].set(x)

    ws = [w for (w, _) in padded_params]
    bs = [b for (_, b) in padded_params]

    grid = (Bp // TB,)
    in_specs = [pl.BlockSpec((TB, K), lambda i: (i, 0))]            # true K, no pad
    in_specs += [pl.BlockSpec(w.shape, lambda i: (0, 0)) for w in ws]  # pinned
    in_specs += [pl.BlockSpec(b.shape, lambda i: (0, 0)) for b in bs]  # pinned
    out_spec = pl.BlockSpec((TB, out_dim), lambda i: (i, 0))        # true out_dim

    out_p = pl.pallas_call(
        functools.partial(_fused_mlp_kernel, relu_flags=relu_flags),
        out_shape=jax.ShapeDtypeStruct((Bp, out_dim), x.dtype),
        grid=grid,
        in_specs=in_specs,
        out_specs=out_spec,
        compiler_params=pltpu.CompilerParams(
            # batch axis is independent -> megacore / 2-TC sharding on v7x
            dimension_semantics=("parallel",),
            # explicit limit: above v5e's 16 MiB scoped default, far below
            # v7x's 64 MiB physical; all blocks here total well under 4 MiB.
            vmem_limit_bytes=32 * 1024 * 1024,
        ),
    )(x_p, *ws, *bs)

    return out_p if Bp == B else out_p[:B]


# ----------------------------------------------------------------------------
# Pure-JAX references for correctness checking
# ----------------------------------------------------------------------------
def batch_net_ref_f32(x, params):
    """Unfolded, full-f32 reference (semantic check)."""
    for (w, b, scale, shift, relu) in params:
        y = x @ w + b
        y = y * scale + shift
        if relu:
            y = jnp.maximum(y, 0.0)
        x = y
    return x


def batch_net_ref_same_dtype(x, params):
    """Folded reference that mirrors the kernel's dtype path exactly
    (bf16 operands, f32 accumulation/bias/ReLU) — tight tolerance check."""
    h = x.astype(MATMUL_DTYPE)
    acc = None
    n_layers = len(params)
    for i, (w, b, scale, shift, relu) in enumerate(params):
        w_folded = (w * scale[None, :]).astype(MATMUL_DTYPE)
        b_folded = (b * scale + shift).astype(jnp.float32)
        acc = jnp.dot(h, w_folded, preferred_element_type=jnp.float32) + b_folded
        if relu:
            acc = jnp.maximum(acc, 0.0)
        if i != n_layers - 1:
            h = acc.astype(MATMUL_DTYPE)
    return acc.astype(x.dtype)


if __name__ == "__main__":
    batch = 8
    dims = [32, 64, 64, 32, 64, 32, 16]  # in, h1..h5, out

    key = jax.random.PRNGKey(0)
    k_x, k_p = jax.random.split(key)
    x = jax.random.normal(k_x, (batch, dims[0]), jnp.float32)

    params = make_params(k_p, dims)
    padded_params, relu_flags = prepare_padded_params(params)

    out = batch_net_forward(x, padded_params, relu_flags)
    out = jax.block_until_ready(out)
    assert out.shape == (batch, dims[-1]), out.shape

    # Tight check vs a reference that follows the same bf16-operand path.
    ref_same = batch_net_ref_same_dtype(x, params)
    assert jnp.allclose(out, ref_same, atol=2e-3, rtol=2e-3), \
        "mismatch vs same-dtype reference"

    # Loose semantic check vs the unfolded full-f32 reference (bf16 operand
    # rounding accounts for the tolerance).
    ref_f32 = batch_net_ref_f32(x, params)
    assert jnp.allclose(out, ref_f32, atol=5e-2, rtol=5e-2), \
        "mismatch vs f32 reference"

    print("KERNEL_OK")
</pallas_src>

<mosaic_0001>
module attributes {stable_mosaic.version = 11 : i64} {
  func.func @_fused_mlp_kernel(%arg0: i32, %arg1: memref<8x32xf32, #tpu.memory_space<vmem>>, %arg2: memref<32x128xbf16, #tpu.memory_space<vmem>>, %arg3: memref<128x128xbf16, #tpu.memory_space<vmem>>, %arg4: memref<128x128xbf16, #tpu.memory_space<vmem>>, %arg5: memref<128x128xbf16, #tpu.memory_space<vmem>>, %arg6: memref<128x128xbf16, #tpu.memory_space<vmem>>, %arg7: memref<128x16xbf16, #tpu.memory_space<vmem>>, %arg8: memref<1x128xf32, #tpu.memory_space<vmem>>, %arg9: memref<1x128xf32, #tpu.memory_space<vmem>>, %arg10: memref<1x128xf32, #tpu.memory_space<vmem>>, %arg11: memref<1x128xf32, #tpu.memory_space<vmem>>, %arg12: memref<1x128xf32, #tpu.memory_space<vmem>>, %arg13: memref<1x16xf32, #tpu.memory_space<vmem>>, %arg14: memref<8x16xf32, #tpu.memory_space<vmem>>) attributes {dimension_semantics = [#tpu.dimension_semantics<parallel>], iteration_bounds = array<i64: 1>, scalar_prefetch = 0 : i64, scratch_operands = 0 : i64, tpu.core_type = #tpu.core_type<tc>, window_params = [{transform_indices = @transform_0, window_bounds = array<i64: 8, 32>}, {pipeline_mode = #tpu.pipeline_mode<synchronous>, transform_indices = @transform_1, window_bounds = array<i64: 32, 128>}, {pipeline_mode = #tpu.pipeline_mode<synchronous>, transform_indices = @transform_2, window_bounds = array<i64: 128, 128>}, {pipeline_mode = #tpu.pipeline_mode<synchronous>, transform_indices = @transform_3, window_bounds = array<i64: 128, 128>}, {pipeline_mode = #tpu.pipeline_mode<synchronous>, transform_indices = @transform_4, window_bounds = array<i64: 128, 128>}, {pipeline_mode = #tpu.pipeline_mode<synchronous>, transform_indices = @transform_5, window_bounds = array<i64: 128, 128>}, {pipeline_mode = #tpu.pipeline_mode<synchronous>, transform_indices = @transform_6, window_bounds = array<i64: 128, 16>}, {pipeline_mode = #tpu.pipeline_mode<synchronous>, transform_indices = @transform_7, window_bounds = array<i64: 1, 128>}, {pipeline_mode = #tpu.pipeline_mode<synchronous>, transform_indices = @transform_8, window_bounds = array<i64: 1, 128>}, {pipeline_mode = #tpu.pipeline_mode<synchronous>, transform_indices = @transform_9, window_bounds = array<i64: 1, 128>}, {pipeline_mode = #tpu.pipeline_mode<synchronous>, transform_indices = @transform_10, window_bounds = array<i64: 1, 128>}, {pipeline_mode = #tpu.pipeline_mode<synchronous>, transform_indices = @transform_11, window_bounds = array<i64: 1, 128>}, {pipeline_mode = #tpu.pipeline_mode<synchronous>, transform_indices = @transform_12, window_bounds = array<i64: 1, 16>}, {transform_indices = @transform_13, window_bounds = array<i64: 8, 16>}]} {
    %c0 = arith.constant 0 : index
    %c0_0 = arith.constant 0 : index
    %0 = vector.load %arg1[%c0, %c0_0] : memref<8x32xf32, #tpu.memory_space<vmem>>, vector<8x32xf32>
    %1 = arith.truncf %0 : vector<8x32xf32> to vector<8x32xbf16>
    %c0_1 = arith.constant 0 : index
    %c0_2 = arith.constant 0 : index
    %2 = vector.load %arg2[%c0_1, %c0_2] : memref<32x128xbf16, #tpu.memory_space<vmem>>, vector<32x128xbf16>
    %cst = arith.constant dense<0.000000e+00> : vector<8x128xf32>
    %3 = tpu.matmul %1, %2, %cst {dimension_numbers = #tpu.dot_dimension_numbers<[1], [0], [0], [1], [0, 0, 1, 1], [], []>} : vector<8x32xbf16>, vector<32x128xbf16>, vector<8x128xf32> -> vector<8x128xf32>
    %c0_3 = arith.constant 0 : index
    %c0_4 = arith.constant 0 : index
    %4 = vector.load %arg8[%c0_3, %c0_4] : memref<1x128xf32, #tpu.memory_space<vmem>>, vector<1x128xf32>
    %5 = vector.broadcast %4 : vector<1x128xf32> to vector<8x128xf32>
    %6 = arith.addf %3, %5 : vector<8x128xf32>
    %cst_5 = arith.constant 0.000000e+00 : f32
    %7 = vector.broadcast %cst_5 : f32 to vector<8x128xf32>
    %8 = arith.maximumf %6, %7 : vector<8x128xf32>
    %9 = arith.truncf %8 : vector<8x128xf32> to vector<8x128xbf16>
    %c0_6 = arith.constant 0 : index
    %c0_7 = arith.constant 0 : index
    %10 = vector.load %arg3[%c0_6, %c0_7] : memref<128x128xbf16, #tpu.memory_space<vmem>>, vector<128x128xbf16>
    %cst_8 = arith.constant dense<0.000000e+00> : vector<8x128xf32>
    %11 = tpu.matmul %9, %10, %cst_8 {dimension_numbers = #tpu.dot_dimension_numbers<[1], [0], [0], [1], [0, 0, 1, 1], [], []>} : vector<8x128xbf16>, vector<128x128xbf16>, vector<8x128xf32> -> vector<8x128xf32>
    %c0_9 = arith.constant 0 : index
    %c0_10 = arith.constant 0 : index
    %12 = vector.load %arg9[%c0_9, %c0_10] : memref<1x128xf32, #tpu.memory_space<vmem>>, vector<1x128xf32>
    %13 = vector.broadcast %12 : vector<1x128xf32> to vector<8x128xf32>
    %14 = arith.addf %11, %13 : vector<8x128xf32>
    %cst_11 = arith.constant 0.000000e+00 : f32
    %15 = vector.broadcast %cst_11 : f32 to vector<8x128xf32>
    %16 = arith.maximumf %14, %15 : vector<8x128xf32>
    %17 = arith.truncf %16 : vector<8x128xf32> to vector<8x128xbf16>
    %c0_12 = arith.constant 0 : index
    %c0_13 = arith.constant 0 : index
    %18 = vector.load %arg4[%c0_12, %c0_13] : memref<128x128xbf16, #tpu.memory_space<vmem>>, vector<128x128xbf16>
    %cst_14 = arith.constant dense<0.000000e+00> : vector<8x128xf32>
    %19 = tpu.matmul %17, %18, %cst_14 {dimension_numbers = #tpu.dot_dimension_numbers<[1], [0], [0], [1], [0, 0, 1, 1], [], []>} : vector<8x128xbf16>, vector<128x128xbf16>, vector<8x128xf32> -> vector<8x128xf32>
    %c0_15 = arith.constant 0 : index
    %c0_16 = arith.constant 0 : index
    %20 = vector.load %arg10[%c0_15, %c0_16] : memref<1x128xf32, #tpu.memory_space<vmem>>, vector<1x128xf32>
    %21 = vector.broadcast %20 : vector<1x128xf32> to vector<8x128xf32>
    %22 = arith.addf %19, %21 : vector<8x128xf32>
    %23 = arith.truncf %22 : vector<8x128xf32> to vector<8x128xbf16>
    %c0_17 = arith.constant 0 : index
    %c0_18 = arith.constant 0 : index
    %24 = vector.load %arg5[%c0_17, %c0_18] : memref<128x128xbf16, #tpu.memory_space<vmem>>, vector<128x128xbf16>
    %cst_19 = arith.constant dense<0.000000e+00> : vector<8x128xf32>
    %25 = tpu.matmul %23, %24, %cst_19 {dimension_numbers = #tpu.dot_dimension_numbers<[1], [0], [0], [1], [0, 0, 1, 1], [], []>} : vector<8x128xbf16>, vector<128x128xbf16>, vector<8x128xf32> -> vector<8x128xf32>
    %c0_20 = arith.constant 0 : index
    %c0_21 = arith.constant 0 : index
    %26 = vector.load %arg11[%c0_20, %c0_21] : memref<1x128xf32, #tpu.memory_space<vmem>>, vector<1x128xf32>
    %27 = vector.broadcast %26 : vector<1x128xf32> to vector<8x128xf32>
    %28 = arith.addf %25, %27 : vector<8x128xf32>
    %cst_22 = arith.constant 0.000000e+00 : f32
    %29 = vector.broadcast %cst_22 : f32 to vector<8x128xf32>
    %30 = arith.maximumf %28, %29 : vector<8x128xf32>
    %31 = arith.truncf %30 : vector<8x128xf32> to vector<8x128xbf16>
    %c0_23 = arith.constant 0 : index
    %c0_24 = arith.constant 0 : index
    %32 = vector.load %arg6[%c0_23, %c0_24] : memref<128x128xbf16, #tpu.memory_space<vmem>>, vector<128x128xbf16>
    %cst_25 = arith.constant dense<0.000000e+00> : vector<8x128xf32>
    %33 = tpu.matmul %31, %32, %cst_25 {dimension_numbers = #tpu.dot_dimension_numbers<[1], [0], [0], [1], [0, 0, 1, 1], [], []>} : vector<8x128xbf16>, vector<128x128xbf16>, vector<8x128xf32> -> vector<8x128xf32>
    %c0_26 = arith.constant 0 : index
    %c0_27 = arith.constant 0 : index
    %34 = vector.load %arg12[%c0_26, %c0_27] : memref<1x128xf32, #tpu.memory_space<vmem>>, vector<1x128xf32>
    %35 = vector.broadcast %34 : vector<1x128xf32> to vector<8x128xf32>
    %36 = arith.addf %33, %35 : vector<8x128xf32>
    %cst_28 = arith.constant 0.000000e+00 : f32
    %37 = vector.broadcast %cst_28 : f32 to vector<8x128xf32>
    %38 = arith.maximumf %36, %37 : vector<8x128xf32>
    %39 = arith.truncf %38 : vector<8x128xf32> to vector<8x128xbf16>
    %c0_29 = arith.constant 0 : index
    %c0_30 = arith.constant 0 : index
    %40 = vector.load %arg7[%c0_29, %c0_30] : memref<128x16xbf16, #tpu.memory_space<vmem>>, vector<128x16xbf16>
    %cst_31 = arith.constant dense<0.000000e+00> : vector<8x16xf32>
    %41 = tpu.matmul %39, %40, %cst_31 {dimension_numbers = #tpu.dot_dimension_numbers<[1], [0], [0], [1], [0, 0, 1, 1], [], []>} : vector<8x128xbf16>, vector<128x16xbf16>, vector<8x16xf32> -> vector<8x16xf32>
    %c0_32 = arith.constant 0 : index
    %c0_33 = arith.constant 0 : index
    %42 = vector.load %arg13[%c0_32, %c0_33] : memref<1x16xf32, #tpu.memory_space<vmem>>, vector<1x16xf32>
    %43 = vector.broadcast %42 : vector<1x16xf32> to vector<8x16xf32>
    %44 = arith.addf %41, %43 : vector<8x16xf32>
    %c0_34 = arith.constant 0 : index
    %c0_35 = arith.constant 0 : index
    %45 = vector.load %arg14[%c0_34, %c0_35] : memref<8x16xf32, #tpu.memory_space<vmem>>, vector<8x16xf32>
    tpu.vector_store %arg14[%c0_34, %c0_35], %44 {strides = array<i32>} : memref<8x16xf32, #tpu.memory_space<vmem>>, vector<8x16xf32>,
    return
  }
  func.func @transform_0(%arg0: i32) -> (i32, i32) {
    %c0_i32 = arith.constant 0 : i32
    %c0_i32_0 = arith.constant 0 : i32
    return %arg0, %c0_i32 : i32, i32
  }
  func.func @transform_1(%arg0: i32) -> (i32, i32) {
    %c0_i32 = arith.constant 0 : i32
    %c0_i32_0 = arith.constant 0 : i32
    %c0_i32_1 = arith.constant 0 : i32
    return %c0_i32, %c0_i32_0 : i32, i32
  }
  func.func @transform_2(%arg0: i32) -> (i32, i32) {
    %c0_i32 = arith.constant 0 : i32
    %c0_i32_0 = arith.constant 0 : i32
    %c0_i32_1 = arith.constant 0 : i32
    return %c0_i32, %c0_i32_0 : i32, i32
  }
  func.func @transform_3(%arg0: i32) -> (i32, i32) {
    %c0_i32 = arith.constant 0 : i32
    %c0_i32_0 = arith.constant 0 : i32
    %c0_i32_1 = arith.constant 0 : i32
    return %c0_i32, %c0_i32_0 : i32, i32
  }
  func.func @transform_4(%arg0: i32) -> (i32, i32) {
    %c0_i32 = arith.constant 0 : i32
    %c0_i32_0 = arith.constant 0 : i32
    %c0_i32_1 = arith.constant 0 : i32
    return %c0_i32, %c0_i32_0 : i32, i32
  }
  func.func @transform_5(%arg0: i32) -> (i32, i32) {
    %c0_i32 = arith.constant 0 : i32
    %c0_i32_0 = arith.constant 0 : i32
    %c0_i32_1 = arith.constant 0 : i32
    return %c0_i32, %c0_i32_0 : i32, i32
  }
  func.func @transform_6(%arg0: i32) -> (i32, i32) {
    %c0_i32 = arith.constant 0 : i32
    %c0_i32_0 = arith.constant 0 : i32
    %c0_i32_1 = arith.constant 0 : i32
    return %c0_i32, %c0_i32_0 : i32, i32
  }
  func.func @transform_7(%arg0: i32) -> (i32, i32) {
    %c0_i32 = arith.constant 0 : i32
    %c0_i32_0 = arith.constant 0 : i32
    %c0_i32_1 = arith.constant 0 : i32
    return %c0_i32, %c0_i32_0 : i32, i32
  }
  func.func @transform_8(%arg0: i32) -> (i32, i32) {
    %c0_i32 = arith.constant 0 : i32
    %c0_i32_0 = arith.constant 0 : i32
    %c0_i32_1 = arith.constant 0 : i32
    return %c0_i32, %c0_i32_0 : i32, i32
  }
  func.func @transform_9(%arg0: i32) -> (i32, i32) {
    %c0_i32 = arith.constant 0 : i32
    %c0_i32_0 = arith.constant 0 : i32
    %c0_i32_1 = arith.constant 0 : i32
    return %c0_i32, %c0_i32_0 : i32, i32
  }
  func.func @transform_10(%arg0: i32) -> (i32, i32) {
    %c0_i32 = arith.constant 0 : i32
    %c0_i32_0 = arith.constant 0 : i32
    %c0_i32_1 = arith.constant 0 : i32
    return %c0_i32, %c0_i32_0 : i32, i32
  }
  func.func @transform_11(%arg0: i32) -> (i32, i32) {
    %c0_i32 = arith.constant 0 : i32
    %c0_i32_0 = arith.constant 0 : i32
    %c0_i32_1 = arith.constant 0 : i32
    return %c0_i32, %c0_i32_0 : i32, i32
  }
  func.func @transform_12(%arg0: i32) -> (i32, i32) {
    %c0_i32 = arith.constant 0 : i32
    %c0_i32_0 = arith.constant 0 : i32
    %c0_i32_1 = arith.constant 0 : i32
    return %c0_i32, %c0_i32_0 : i32, i32
  }
  func.func @transform_13(%arg0: i32) -> (i32, i32) {
    %c0_i32 = arith.constant 0 : i32
    %c0_i32_0 = arith.constant 0 : i32
    return %arg0, %c0_i32 : i32, i32
  }
}

</mosaic_0001>

<bundles_post_ra>
// kernel: tpu_custom_call.1
= control target key start
LH: loop header
LB: loop body
LE: loop exit
PB: predicated region body
PF: predicated region fallthrough
CT: control target
= control target key end

     0   :  { %18 = vsyncpa [#allocation3], 0  ;;  %s1415_s0 = inlined_call_operand.vmem [shape: f32[8,32], index: 0, kind: input, shape index: {}]   ;;  %s1416_s1 = inlined_call_operand.hbm [shape: bf16[32,128], index: 1, kind: input, shape index: {}]   ;;  %s1417_s2 = inlined_call_operand.vmem [shape: bf16[128,128], index: 2, kind: input, shape index: {}]   ;;  %s1418_s3 = inlined_call_operand.hbm [shape: bf16[128,128], index: 3, kind: input, shape index: {}]   ;;  %s1419_s4 = inlined_call_operand.hbm [shape: bf16[128,128], index: 4, kind: input, shape index: {}]   ;;  %s1420_s5 = inlined_call_operand.hbm [shape: bf16[128,128], index: 5, kind: input, shape index: {}]   ;;  %s1421_s6 = inlined_call_operand.vmem [shape: bf16[128,16], index: 6, kind: input, shape index: {}]   ;;  %s1422_s7 = inlined_call_operand.vmem [shape: f32[1,128], index: 7, kind: input, shape index: {}]   ;;  %s1423_s8 = inlined_call_operand.vmem [shape: f32[1,128], index: 8, kind: input, shape index: {}]   ;;  %s1424_s9 = inlined_call_operand.vmem [shape: f32[1,128], index: 9, kind: input, shape index: {}]   ;;  %s1425_s10 = inlined_call_operand.vmem [shape: f32[1,128], index: 10, kind: input, shape index: {}]   ;;  %s1426_s11 = inlined_call_operand.vmem [shape: f32[1,128], index: 11, kind: input, shape index: {}]   ;;  %s1427_s12 = inlined_call_operand.vmem [shape: f32[1,16], index: 12, kind: input, shape index: {}]   ;;  %s1428_s13 = inlined_call_operand.hbm [shape: f32[8,16], index: 13, kind: output, shape index: {}]  }
   0x1   :  { %19 = vsyncpa [#allocation6], 0 }
   0x2   :  { %20 = vsyncpa [#allocation9], 0 }
   0x3   :  { %21 = vsyncpa [#allocation4], 0  ;;  %s1127_s25 = smov [#allocation5]   ;;  %s1128_s27 = smov [#allocation2]  }
   0x4   :  { %s43_s26 = sshll.u32 %s1127_s25, 4  ;;  %s29_s28 = sshll.u32 %s1128_s27, 4  ;;  %s44_s26 = int_to_ptr.vmem [resolvable:$true] %s43_s26  ;;  %s1206_s28 = int_to_ptr.vmem [resolvable:$true] %s29_s28 }
   0x5   :  { %s1009_s14 = scalar_lea.hbm %s1418_s3, 1024 }
   0x6   :  { %p1010_p0 = scmp.ne.s32.totalorder %s1418_s3, %s1009_s14  ;;  %p1013_p1 = scmp.lt.u32.totalorder %s1009_s14, %s1418_s3 }
   0x8   :  { %p1015_p2 = pnand %p1013_p1, %p1010_p0 }
   0xa   :  { %1018 = shalt.err (!%p1015_p2)
}
   0xb   :  { %s1019_s19 = scalar_lea.vmem %s44_s26, 1024  ;;  %p1024_p4 = scmp.lt.s32.totalorder %s44_s26, %s44_s26 }
   0xc   :  { %p1020_p3 = scmp.ne.s32.totalorder %s44_s26, %s1019_s19  ;;  %p1025_p5 = scmp.lt.s32.totalorder %s1019_s19, %s1019_s19 }
   0xe   :  { %p1026_p6 = por %p1025_p5, %p1024_p4 }
  0x10   :  { %p1027_p7 = pnand %p1026_p6, %p1020_p3 }
  0x12   :  { %1030 = shalt.err (!%p1027_p7)
}
  0x13   :  { %s1129_s20 = smov 64   ;;  %s1130_s21 = smov 4  }
  0x14   :  { %49 = dma.hbm_to_vmem [thread:$0]  %s1418_s3, 1024, %s44_s26, [#allocation6], %s1129_s20, %s1129_s20, %s1130_s21  }
  0x15   :  { %s1031_s27 = scalar_lea.hbm %s1416_s1, 256 }
  0x16   :  { %p1032_p8 = scmp.ne.s32.totalorder %s1416_s1, %s1031_s27  ;;  %p1035_p9 = scmp.lt.u32.totalorder %s1031_s27, %s1416_s1 }
  0x18   :  { %p1037_p10 = pnand %p1035_p9, %p1032_p8 }
  0x1a   :  { %1040 = shalt.err (!%p1037_p10)
}
  0x1b   :  { %s1041_s16 = scalar_lea.vmem %s1206_s28, 256  ;;  %p1046_p12 = scmp.lt.s32.totalorder %s1206_s28, %s1206_s28 }
  0x1c   :  { %p1042_p11 = scmp.ne.s32.totalorder %s1206_s28, %s1041_s16  ;;  %p1047_p13 = scmp.lt.s32.totalorder %s1041_s16, %s1041_s16 }
  0x1e   :  { %p1048_p0 = por %p1047_p13, %p1046_p12 }
  0x20   :  { %p1049_p1 = pnand %p1048_p0, %p1042_p11 }
  0x22   :  { %1052 = shalt.err (!%p1049_p1)
}
  0x23   :  { %35 = dma.hbm_to_vmem [thread:$0]  %s1416_s1, 256, %s1206_s28, [#allocation3], %s1129_s20, %s1129_s20, %s1130_s21  }
  0x24   :  { %s1131_s17 = smov [#allocation7]   ;;  %s1132_s19 = smov [#allocation8]  }
  0x25   :  { %s55_s18 = sshll.u32 %s1131_s17, 4  ;;  %s67_s22 = sshll.u32 %s1132_s19, 4  ;;  %s56_s18 = int_to_ptr.vmem [resolvable:$true] %s55_s18  ;;  %s1243_s22 = int_to_ptr.vmem [resolvable:$true] %s67_s22 }
  0x26   :  { %s1053_s25 = scalar_lea.hbm %s1419_s4, 1024 }
  0x27   :  { %p1054_p2 = scmp.ne.s32.totalorder %s1419_s4, %s1053_s25  ;;  %p1057_p3 = scmp.lt.u32.totalorder %s1053_s25, %s1419_s4 }
  0x29   :  { %p1059_p4 = pnand %p1057_p3, %p1054_p2 }
  0x2b   :  { %1062 = shalt.err (!%p1059_p4)
}
  0x2c   :  { %s1063_s1 = scalar_lea.vmem %s56_s18, 1024  ;;  %p1068_p6 = scmp.lt.s32.totalorder %s56_s18, %s56_s18 }
  0x2d   :  { %p1064_p5 = scmp.ne.s32.totalorder %s56_s18, %s1063_s1  ;;  %p1069_p7 = scmp.lt.s32.totalorder %s1063_s1, %s1063_s1 }
  0x2f   :  { %p1070_p8 = por %p1069_p7, %p1068_p6 }
  0x31   :  { %p1071_p9 = pnand %p1070_p8, %p1064_p5 }
  0x33   :  { %1074 = shalt.err (!%p1071_p9)
}
  0x34   :  { %61 = dma.hbm_to_vmem [thread:$0]  %s1419_s4, 1024, %s56_s18, [#allocation6], %s1129_s20, %s1129_s20, %s1130_s21  }
  0x35   :  { %s1075_s26 = scalar_lea.hbm %s1420_s5, 1024 }
  0x36   :  { %p1076_p10 = scmp.ne.s32.totalorder %s1420_s5, %s1075_s26  ;;  %p1079_p11 = scmp.lt.u32.totalorder %s1075_s26, %s1420_s5 }
  0x38   :  { %p1081_p12 = pnand %p1079_p11, %p1076_p10 }
  0x3a   :  { %1084 = shalt.err (!%p1081_p12)
}
  0x3b   :  { %s1085_s25 = scalar_lea.vmem %s1243_s22, 1024  ;;  %p1090_p0 = scmp.lt.s32.totalorder %s1243_s22, %s1243_s22 }
  0x3c   :  { %p1086_p13 = scmp.ne.s32.totalorder %s1243_s22, %s1085_s25  ;;  %p1091_p1 = scmp.lt.s32.totalorder %s1085_s25, %s1085_s25 }
  0x3e   :  { %p1092_p2 = por %p1091_p1, %p1090_p0 }
  0x40   :  { %p1093_p3 = pnand %p1092_p2, %p1086_p13 }
  0x42   :  { %1096 = shalt.err (!%p1093_p3)
}
  0x43   :  { %73 = dma.hbm_to_vmem [thread:$0]  %s1420_s5, 1024, %s1243_s22, [#allocation9], %s1129_s20, %s1129_s20, %s1130_s21  }
  0x44   :  { %1119 = dma.done.wait [#allocation3], 256  }
  0x45   :  { %1120 = vsyncadd [#allocation3], 4294967040 }
  0x46   :  { %1121 = dma.done.wait [#allocation6], 2048  }
  0x47   :  { %1122 = vsyncadd [#allocation6], 4294965248 }
  0x48   :  { %1123 = dma.done.wait [#allocation9], 1024  }
  0x49   :  { %1124 = vsyncadd [#allocation9], 4294966272  ;;  %v1133_v0 = vmov 0.0   ;;  %vm1134_vm0 = vmmov 0   ;;  %v967_v1 = vld [vmem:[#allocation2] sm:$0xff]   ;;  %v968_v2 = vld [vmem:[#allocation2 + $0x8] sm:$0xff]  }
  0x4a   :  { %850 = vmatprep.subr.bf16.mxu0 %v1133_v0  ;;  %854 = vmatprep.mubr.msk.bf16.mxu0 %vm1134_vm0, %v1133_v0  ;;  %v101_v3 = vld [vmem:[%s1415_s0] sm:$0xff]  ;;  %v970_v6 = vld [vmem:[%s1417_s2 + $0x8] sm:$0xff]   ;;  %vm126_vm1 = vcmask 261120   ;;  %v971_v7 = vld [vmem:[%s1417_s2 + $0x10] sm:$0xff]   ;;  %s1135_s24 = smov [#allocation10]   ;;  %vm734_vm2 = vcmask 130048  }
  0x4b   :  { %858 = vmatprep.subr.bf16.mxu1 %v1133_v0  ;;  %874 = vmatprep.mubr.msk.bf16.mxu1 %vm1134_vm0, %v1133_v0  ;;  %v969_v4 = vld [vmem:[%s1417_s2] sm:$0xff]   ;;  %v102_v5 = vpack.c.bf16 %v101_v3, %v101_v3  ;;  %v972_v8 = vld [vmem:[%s1417_s2 + $0x18] sm:$0xff]   ;;  %v974_v10 = vld [vmem:[%s1417_s2 + $0x28] sm:$0xff]  }
  0x4c   :  { %851 = vmatpush3.bf16.msra.mxu0 %v967_v1  ;;  %859 = vmatpush3.bf16.msra.mxu1 %v969_v4  ;;  %v973_v9 = vld [vmem:[%s1417_s2 + $0x20] sm:$0xff]   ;;  %v975_v11 = vld [vmem:[%s1417_s2 + $0x30] sm:$0xff]   ;;  %v976_v12 = vld [vmem:[%s1417_s2 + $0x38] sm:$0xff]  }
  0x4d   :  { %852 = vmatprep.subr.bf16.mxu0 %v1133_v0  ;;  %860 = vmatprep.subr.bf16.mxu1 %v1133_v0  ;;  %v977_v13 = vld [vmem:[#allocation5] sm:$0xff]   ;;  %v978_v14 = vld [vmem:[#allocation5 + $0x8] sm:$0xff]   ;;  %v979_v15 = vld [vmem:[#allocation5 + $0x10] sm:$0xff]  }
  0x4e   :  { %v980_v16 = vld [vmem:[#allocation5 + $0x18] sm:$0xff]   ;;  %v981_v17 = vld [vmem:[#allocation5 + $0x20] sm:$0xff]   ;;  %v982_v18 = vld [vmem:[#allocation5 + $0x28] sm:$0xff]  }
  0x4f   :  { %v753_v19 = vld [vmem:[%s1422_s7] ss:$0 sm:$0xff]  ;;  %v984_v28 = vld [vmem:[#allocation5 + $0x38] sm:$0xff]   ;;  %v985_v29 = vld [vmem:[#allocation7] sm:$0xff]   ;;  %s742_s7 = sshll.u32 %s1135_s24, 4  ;;  %s743_s7 = int_to_ptr.vmem [resolvable:$true] %s742_s7 }
  0x50   :  { %853 = vmatpush3.bf16.msra.mxu0 %v968_v2  ;;  %861 = vmatpush3.bf16.msra.mxu1 %v970_v6  ;;  %v983_v27 = vld [vmem:[#allocation5 + $0x30] sm:$0xff]   ;;  %v986_v30 = vld [vmem:[#allocation7 + $0x8] sm:$0xff]   ;;  %v988_v32 = vld [vmem:[#allocation7 + $0x18] sm:$0xff]   ;;  %p1102_p5 = scmp.lt.s32.totalorder %s743_s7, %s743_s7 }
  0x51   :  { %878 = vmatprep.subr.bf16.mxu0 %v1133_v0  ;;  %862 = vmatprep.subr.bf16.mxu1 %v1133_v0  ;;  %v987_v31 = vld [vmem:[#allocation7 + $0x10] sm:$0xff]   ;;  %v989_v33 = vld [vmem:[#allocation7 + $0x20] sm:$0xff]   ;;  %v990_v34 = vld [vmem:[#allocation7 + $0x28] sm:$0xff]  }
  0x52   :  { %v991_v35 = vld [vmem:[#allocation7 + $0x30] sm:$0xff]   ;;  %v992_v44 = vld [vmem:[#allocation7 + $0x38] sm:$0xff]   ;;  %v993_v45 = vld [vmem:[#allocation8] sm:$0xff]  }
  0x53   :  { %855 = vmatmul.mubr.msk.bf16.vlgmr.msra.gmra.mrb[0].mxu0 %vm126_vm1, %v102_v5  ;;  %v757_v36 = vld [vmem:[%s1423_s8] ss:$0 sm:$0xff]  ;;  %v994_v46 = vld [vmem:[#allocation8 + $0x8] sm:$0xff]   ;;  %v996_v48 = vld [vmem:[#allocation8 + $0x18] sm:$0xff]  }
  0x54   :  { %894 = vmatprep.mubr.msk.bf16.mxu0 %vm1134_vm0, %v1133_v0  ;;  %863 = vmatpush3.bf16.msra.mxu1 %v971_v7  ;;  %v995_v47 = vld [vmem:[#allocation8 + $0x10] sm:$0xff]   ;;  %v997_v49 = vld [vmem:[#allocation8 + $0x20] sm:$0xff]   ;;  %v998_v50 = vld [vmem:[#allocation8 + $0x28] sm:$0xff]  }
  0x55   :  { %864 = vmatprep.subr.bf16.mxu1 %v1133_v0  ;;  %879 = vmatpush3.bf16.msra.mxu0 %v977_v13  ;;  %v766_v51 = vld [vmem:[%s1424_s9] ss:$0 sm:$0xff]  ;;  %v1000_v59 = vld [vmem:[#allocation8 + $0x38] sm:$0xff]   ;;  %v1003_v62 = vld [vmem:[%s1421_s6 + $0x10] sm:$0xff]  }
  0x56   :  { %880 = vmatprep.subr.bf16.mxu0 %v1133_v0  ;;  %v999_v58 = vld [vmem:[#allocation8 + $0x30] sm:$0xff]   ;;  %v1002_v61 = vld [vmem:[%s1421_s6 + $0x8] sm:$0xff]   ;;  %v1004_v63 = vld [vmem:[%s1421_s6 + $0x18] sm:$0xff]  }
  0x57   :  { %v1001_v60 = vld [vmem:[%s1421_s6] sm:$0xff]   ;;  %v1006_v2 = vld [vmem:[%s1421_s6 + $0x28] sm:$0xff]  }
  0x58   :  { %865 = vmatpush3.bf16.msra.mxu1 %v972_v8  ;;  %v1005_v1 = vld [vmem:[%s1421_s6 + $0x20] sm:$0xff]  }
  0x59   :  { %866 = vmatprep.subr.bf16.mxu1 %v1133_v0  ;;  %881 = vmatpush3.bf16.msra.mxu0 %v978_v14  ;;  %v775_v3 = vld [vmem:[%s1425_s10] ss:$0 sm:$0xff] }
  0x5a   :  { %882 = vmatprep.subr.bf16.mxu0 %v1133_v0  ;;  %v784_v13 = vld [vmem:[%s1426_s11] ss:$0 sm:$0xff] }
  0x5c   :  { %867 = vmatpush3.bf16.msra.mxu1 %v973_v9 }
  0x5d   :  { %868 = vmatprep.subr.bf16.mxu1 %v1133_v0  ;;  %883 = vmatpush3.bf16.msra.mxu0 %v979_v15 }
  0x5e   :  { %884 = vmatprep.subr.bf16.mxu0 %v1133_v0 }
  0x60   :  { %869 = vmatpush3.bf16.msra.mxu1 %v974_v10 }
  0x61   :  { %870 = vmatprep.subr.bf16.mxu1 %v1133_v0  ;;  %885 = vmatpush3.bf16.msra.mxu0 %v980_v16 }
  0x62   :  { %886 = vmatprep.subr.bf16.mxu0 %v1133_v0 }
  0x64   :  { %871 = vmatpush3.bf16.msra.mxu1 %v975_v11  ;;  %v1007_v11 = vld [vmem:[%s1421_s6 + $0x30] sm:$0xff]  }
  0x65   :  { %872 = vmatprep.subr.bf16.mxu1 %v1133_v0  ;;  %887 = vmatpush3.bf16.msra.mxu0 %v981_v17 }
  0x66   :  { %888 = vmatprep.subr.bf16.mxu0 %v1133_v0 }
  0x68   :  { %873 = vmatpush3.bf16.msra.mxu1 %v976_v12  ;;  %v1008_v12 = vld [vmem:[%s1421_s6 + $0x38] sm:$0xff]   ;;  %s1097_s6 = scalar_lea.vmem %s743_s7, 128 }
  0x69   :  { %898 = vmatprep.subr.bf16.mxu1 %v1133_v0  ;;  %889 = vmatpush3.bf16.msra.mxu0 %v982_v18  ;;  %p1098_p4 = scmp.ne.s32.totalorder %s743_s7, %s1097_s6  ;;  %p1103_p6 = scmp.lt.s32.totalorder %s1097_s6, %s1097_s6 }
  0x6a   :  { %890 = vmatprep.subr.bf16.mxu0 %v1133_v0 }
  0x6b   :  { %p1104_p7 = por %p1103_p6, %p1102_p5 }
  0x6d   :  { %891 = vmatpush3.bf16.msra.mxu0 %v983_v27  ;;  %p1105_p8 = pnand %p1104_p7, %p1098_p4 }
  0x6e   :  { %892 = vmatprep.subr.bf16.mxu0 %v1133_v0 }
  0x71   :  { %893 = vmatpush3.bf16.msra.mxu0 %v984_v28 }
  0x72   :  { %918 = vmatprep.subr.bf16.mxu0 %v1133_v0 }
 0x126   :  { %v164_v20 = vpop.f32.mrb[0].mxu0 }
 0x127   :  { %v165_v21 = vadd.f32 %v753_v19, %v164_v20  ;;  %v856_v22 = vpop.f32.mrb[1].mxu0 }
 0x128   :  { %v167_v23 = vpop.f32.mrb[2].mxu0 }
 0x129   :  { %v170_v24 = vmax.f32 %v165_v21, 0.0  ;;  %v857_v25 = vpop.f32.mrb[3].mxu0 }
 0x12b   :  { %v171_v26 = vpack.c.bf16 %v170_v24, %v170_v24 }
 0x12d   :  { %875 = vmatmul.mubr.bf16.vlgmr.msra.gmra.mrb[0].mxu1 %v171_v26 }
 0x12e   :  { %914 = vmatprep.mubr.msk.bf16.mxu1 %vm1134_vm0, %v1133_v0  ;;  %899 = vmatpush3.bf16.msra.mxu1 %v985_v29 }
 0x12f   :  { %900 = vmatprep.subr.bf16.mxu1 %v1133_v0 }
 0x132   :  { %901 = vmatpush3.bf16.msra.mxu1 %v986_v30 }
 0x133   :  { %902 = vmatprep.subr.bf16.mxu1 %v1133_v0 }
 0x136   :  { %903 = vmatpush3.bf16.msra.mxu1 %v987_v31 }
 0x137   :  { %904 = vmatprep.subr.bf16.mxu1 %v1133_v0 }
 0x13a   :  { %905 = vmatpush3.bf16.msra.mxu1 %v988_v32 }
 0x13b   :  { %906 = vmatprep.subr.bf16.mxu1 %v1133_v0 }
 0x13e   :  { %907 = vmatpush3.bf16.msra.mxu1 %v989_v33 }
 0x13f   :  { %908 = vmatprep.subr.bf16.mxu1 %v1133_v0 }
 0x142   :  { %909 = vmatpush3.bf16.msra.mxu1 %v990_v34 }
 0x143   :  { %910 = vmatprep.subr.bf16.mxu1 %v1133_v0 }
 0x146   :  { %911 = vmatpush3.bf16.msra.mxu1 %v991_v35 }
 0x147   :  { %912 = vmatprep.subr.bf16.mxu1 %v1133_v0 }
 0x14a   :  { %913 = vmatpush3.bf16.msra.mxu1 %v992_v44 }
 0x14b   :  { %938 = vmatprep.subr.bf16.mxu1 %v1133_v0 }
 0x200   :  { %v277_v37 = vpop.f32.mrb[0].mxu1 }
 0x201   :  { %v278_v38 = vadd.f32 %v757_v36, %v277_v37  ;;  %v876_v39 = vpop.f32.mrb[1].mxu1 }
 0x202   :  { %v280_v40 = vpop.f32.mrb[2].mxu1 }
 0x203   :  { %v283_v41 = vmax.f32 %v278_v38, 0.0  ;;  %v877_v42 = vpop.f32.mrb[3].mxu1 }
 0x205   :  { %v284_v43 = vpack.c.bf16 %v283_v41, %v283_v41 }
 0x207   :  { %895 = vmatmul.mubr.bf16.vlgmr.msra.gmra.mrb[4].mxu0 %v284_v43 }
 0x208   :  { %934 = vmatprep.mubr.msk.bf16.mxu0 %vm1134_vm0, %v1133_v0  ;;  %919 = vmatpush3.bf16.msra.mxu0 %v993_v45 }
 0x209   :  { %920 = vmatprep.subr.bf16.mxu0 %v1133_v0 }
 0x20c   :  { %921 = vmatpush3.bf16.msra.mxu0 %v994_v46 }
 0x20d   :  { %922 = vmatprep.subr.bf16.mxu0 %v1133_v0 }
 0x210   :  { %923 = vmatpush3.bf16.msra.mxu0 %v995_v47 }
 0x211   :  { %924 = vmatprep.subr.bf16.mxu0 %v1133_v0 }
 0x214   :  { %925 = vmatpush3.bf16.msra.mxu0 %v996_v48 }
 0x215   :  { %926 = vmatprep.subr.bf16.mxu0 %v1133_v0 }
 0x218   :  { %927 = vmatpush3.bf16.msra.mxu0 %v997_v49 }
 0x219   :  { %928 = vmatprep.subr.bf16.mxu0 %v1133_v0 }
 0x21c   :  { %929 = vmatpush3.bf16.msra.mxu0 %v998_v50 }
 0x21d   :  { %930 = vmatprep.subr.bf16.mxu0 %v1133_v0 }
 0x220   :  { %931 = vmatpush3.bf16.msra.mxu0 %v999_v58 }
 0x221   :  { %932 = vmatprep.subr.bf16.mxu0 %v1133_v0 }
 0x224   :  { %933 = vmatpush3.bf16.msra.mxu0 %v1000_v59 }
 0x2da   :  { %v390_v52 = vpop.f32.mrb[4].mxu0 }
 0x2db   :  { %v391_v53 = vadd.f32 %v766_v51, %v390_v52  ;;  %v896_v54 = vpop.f32.mrb[5].mxu0 }
 0x2dc   :  { %v393_v55 = vpop.f32.mrb[6].mxu0 }
 0x2dd   :  { %v396_v56 = vpack.c.bf16 %v391_v53, %v391_v53  ;;  %v897_v57 = vpop.f32.mrb[7].mxu0 }
 0x2df   :  { %915 = vmatmul.mubr.bf16.vlgmr.msra.gmra.mrb[4].mxu1 %v396_v56 }
 0x2e0   :  { %954 = vmatprep.mubr.msk.bf16.mxu1 %vm1134_vm0, %v1133_v0  ;;  %939 = vmatpush3.bf16.msra.mxu1 %v1001_v60 }
 0x2e1   :  { %940 = vmatprep.subr.bf16.mxu1 %v1133_v0 }
 0x2e4   :  { %941 = vmatpush3.bf16.msra.mxu1 %v1002_v61 }
 0x2e5   :  { %942 = vmatprep.subr.bf16.mxu1 %v1133_v0 }
 0x2e8   :  { %943 = vmatpush3.bf16.msra.mxu1 %v1003_v62 }
 0x2e9   :  { %944 = vmatprep.subr.bf16.mxu1 %v1133_v0 }
 0x2ec   :  { %945 = vmatpush3.bf16.msra.mxu1 %v1004_v63 }
 0x2ed   :  { %946 = vmatprep.subr.bf16.mxu1 %v1133_v0 }
 0x2f0   :  { %947 = vmatpush3.bf16.msra.mxu1 %v1005_v1 }
 0x2f1   :  { %948 = vmatprep.subr.bf16.mxu1 %v1133_v0 }
 0x2f4   :  { %949 = vmatpush3.bf16.msra.mxu1 %v1006_v2 }
 0x2f5   :  { %950 = vmatprep.subr.bf16.mxu1 %v1133_v0 }
 0x2f8   :  { %951 = vmatpush3.bf16.msra.mxu1 %v1007_v11 }
 0x2f9   :  { %952 = vmatprep.subr.bf16.mxu1 %v1133_v0  ;;  %v793_v0 = vld [vmem:[%s1427_s12] ss:$0 sm:$0xff] }
 0x2fc   :  { %953 = vmatpush3.bf16.msra.mxu1 %v1008_v12 }
 0x3b2   :  { %v502_v4 = vpop.f32.mrb[4].mxu1 }
 0x3b3   :  { %v503_v5 = vadd.f32 %v775_v3, %v502_v4  ;;  %v916_v6 = vpop.f32.mrb[5].mxu1 }
 0x3b4   :  { %v505_v7 = vpop.f32.mrb[6].mxu1 }
 0x3b5   :  { %v508_v8 = vmax.f32 %v503_v5, 0.0  ;;  %v917_v9 = vpop.f32.mrb[7].mxu1 }
 0x3b7   :  { %v509_v10 = vpack.c.bf16 %v508_v8, %v508_v8 }
 0x3b9   :  { %935 = vmatmul.mubr.bf16.vlgmr.msra.gmra.mrb[8].mxu0 %v509_v10 }
 0x48c   :  { %v615_v14 = vpop.f32.mrb[8].mxu0 }
 0x48d   :  { %v616_v15 = vadd.f32 %v784_v13, %v615_v14  ;;  %v936_v16 = vpop.f32.mrb[9].mxu0 }
 0x48e   :  { %v618_v17 = vpop.f32.mrb[10].mxu0 }
 0x48f   :  { %v621_v18 = vmax.f32 %v616_v15, 0.0  ;;  %v937_v19 = vpop.f32.mrb[11].mxu0 }
 0x491   :  { %v622_v20 = vpack.c.bf16 %v621_v18, %v621_v18 }
 0x493   :  { %955 = vmatmul.mubr.bf16.vlgmr.msra.gmra.mrb[8].mxu1 %v622_v20 }
 0x566   :  { %v728_v21 = vpop.f32.mrb[8].mxu1 }
 0x567   :  { %v729_v22 = vadd.f32 %v793_v0, %v728_v21  ;;  %v956_v23 = vpop.f32.mrb[9].mxu1 }
 0x568   :  { %v731_v24 = vpop.f32.mrb[10].mxu1 }
 0x569   :  { %v957_v25 = vpop.f32.mrb[11].mxu1  ;;  %735 = vst.msk [vmem:[#allocation10] sm:$0xff] %vm734_vm2, %v729_v22 }
 0x56a   :  { %1108 = shalt.err (!%p1105_p8)
}
 0x56b   :  { %s1109_s12 = scalar_lea.hbm %s1428_s13, 128 }
 0x56c   :  { %p1110_p9 = scmp.ne.s32.totalorder %s1428_s13, %s1109_s12  ;;  %p1113_p10 = scmp.lt.u32.totalorder %s1109_s12, %s1428_s13 }
 0x56e   :  { %p1115_p11 = pnand %p1113_p10, %p1110_p9 }
 0x570   :  { %1118 = shalt.err (!%p1115_p11)
}
 0x571   :  { %745 = dma.vmem_to_hbm [thread:$0]  %s743_s7, 128, %s1428_s13, [#allocation4]  }
 0x572   :  { %1125 = dma.done.wait [#allocation4], 128  }
 0x573   :  { %1126 = vsyncadd [#allocation4], 4294967168 }
 0x574   :  { %749 = vsyncpa [#allocation3], 1 }
 0x575   :  { %750 = vsyncpa [#allocation6], 1 }
 0x576   :  { %751 = vsyncpa [#allocation9], 1 }
 0x577   :  { %752 = vsyncpa [#allocation4], 1 }

</bundles_post_ra>
